<compile_context>
chip_gen: v7x
topology: tpu7x:2x2x1
jax: 0.10.0
libtpu: 0.0.40
codegen_flags: <defaults>
</compile_context>

<pallas_src>
import math

import jax
import jax.numpy as jnp
from jax.experimental import pallas as pl
from jax.experimental.pallas import tpu as pltpu

EPS = 1e-5                       # torch.nn.LayerNorm default eps
_SQRT1_2 = 0.7071067811865476
VMEM_LIMIT = 64 * 1024 * 1024    # > v5e/v6e scoped defaults; == v7x physical (usage ≪)

_CP = pltpu.CompilerParams(dimension_semantics=("parallel",),
                           vmem_limit_bytes=VMEM_LIMIT)


def _row_tile(m, target=512):
    """Largest row-tile <= target that is a multiple of 8 and divides m (else full m)."""
    if m <= target:
        return m
    t = (target // 8) * 8
    while t >= 8:
        if m % t == 0:
            return t
        t -= 8
    return m


def _gelu(x):
    # exact erf-based gelu (F.gelu default)
    return 0.5 * x * (1.0 + jax.lax.erf(x * _SQRT1_2))


def _layernorm(v, g, b):
    mean = jnp.mean(v, axis=-1, keepdims=True)
    c = v - mean
    var = jnp.mean(c * c, axis=-1, keepdims=True)
    return c * jax.lax.rsqrt(var + EPS) * g + b


# --------------------- 1) token embedding + positional add --------------------- #

def _embed_kernel(xt_ref, w_ref, pe_ref, o_ref):
    y = jnp.dot(xt_ref[...], w_ref[...], preferred_element_type=jnp.float32)
    o_ref[...] = (y + pe_ref[...]).astype(o_ref.dtype)


def data_embedding(x_taps, pe, tok_w):
    """x_taps: (B, L, 3C) [taps l-1, l, l+1]; tok_w: (3C, D); pe: (L, D) -> (B, L, D)."""
    B, L, C3 = x_taps.shape
    D = tok_w.shape[1]
    return pl.pallas_call(
        _embed_kernel,
        out_shape=jax.ShapeDtypeStruct((B, L, D), x_taps.dtype),
        grid=(B,),
        in_specs=[
            pl.BlockSpec((None, L, C3), lambda b: (b, 0, 0)),
            pl.BlockSpec((C3, D), lambda b: (0, 0)),
            pl.BlockSpec((L, D), lambda b: (0, 0)),
        ],
        out_specs=pl.BlockSpec((None, L, D), lambda b: (b, 0, 0)),
        compiler_params=_CP,
    )(x_taps, tok_w, pe)


# ------------- 2) fused encoder layer: QKV + linear attention + Wo+LN1 + FFN+LN2 ------------- #

def _layer_kernel(x_ref, wqkv_ref, bqkv_ref, mask_ref, hind_ref, hindt_ref,
                  wo_ref, bo_ref, g1_ref, be1_ref,
                  c1w_ref, c1b_ref, c2w_ref, c2b_ref, g2_ref, be2_ref,
                  qk_ref, out_ref):
    D = wo_ref.shape[0]
    x = x_ref[...].astype(jnp.float32)                                          # (L, D)

    # --- merged Q/K/V projection: one MXU weight push, lane-dense (L, 3D) result ---
    qkv = jnp.dot(x, wqkv_ref[...], preferred_element_type=jnp.float32) + bqkv_ref[...]
    qk_ref[...] = qkv[:, :2 * D].astype(qk_ref.dtype)     # only q|k leave the chip
    q = qkv[:, :D]
    k = qkv[:, D:2 * D]
    v = qkv[:, 2 * D:]

    # --- linear attention, feature map phi(x) = elu(x) + 1 ---
    qf = jnp.where(q > 0, q + 1.0, jnp.exp(jnp.minimum(q, 0.0)))
    kf = jnp.where(k > 0, k + 1.0, jnp.exp(jnp.minimum(k, 0.0)))
    # per-head K^T V restricted via block-diagonal mask; contraction over L expressed
    # directly (no materialized transpose of kf).
    kv = jax.lax.dot_general(kf, v, (((0,), (0,)), ((), ())),
                             preferred_element_type=jnp.float32) * mask_ref[...]  # (D, D)
    num = jnp.dot(qf, kv, preferred_element_type=jnp.float32)                     # (L, D)
    ksum = jnp.sum(kf, axis=0, keepdims=True)                                     # (1, D)
    den_h = jnp.dot(qf * ksum, hind_ref[...], preferred_element_type=jnp.float32)  # (L, H)
    den = jnp.dot(den_h, hindt_ref[...], preferred_element_type=jnp.float32)       # (L, D)
    o = num / (den + 1e-6)                                 # exact divide (fidelity)

    # --- output projection + residual + LayerNorm1 ---
    a = jnp.dot(o, wo_ref[...], preferred_element_type=jnp.float32) + bo_ref[...]
    x1 = _layernorm(x + a, g1_ref[...], be1_ref[...])

    # --- FFN (conv1 k=1 + gelu, conv2 k=1) + residual + LayerNorm2 ---
    h = _gelu(jnp.dot(x1, c1w_ref[...], preferred_element_type=jnp.float32) + c1b_ref[...])
    y = jnp.dot(h, c2w_ref[...], preferred_element_type=jnp.float32) + c2b_ref[...]
    out_ref[...] = _layernorm(x1 + y, g2_ref[...], be2_ref[...]).astype(out_ref.dtype)


def encoder_layer(x, wqkv, bqkv, mask, hind, hind_t, wo, bo, g1, b1,
                  c1w, c1b, c2w, c2b, g2, b2):
    """x: (B, L, D) -> (qk: (B, L, 2D), out: (B, L, D)); one pallas_call per layer."""
    B, L, D = x.shape
    F = c1w.shape[1]
    H = hind.shape[1]

    def seq(last):
        return pl.BlockSpec((None, L, last), lambda b: (b, 0, 0))

    def full(r, c):
        # NOTE: on v7x (64 MiB VMEM) these constant-index weight specs could carry
        # pipeline_mode=pl.Buffered(1) to avoid double-buffering; default kept for
        # portability (demo footprint is tiny).
        return pl.BlockSpec((r, c), lambda b: (0, 0))

    return pl.pallas_call(
        _layer_kernel,
        out_shape=(jax.ShapeDtypeStruct((B, L, 2 * D), x.dtype),
                   jax.ShapeDtypeStruct((B, L, D), x.dtype)),
        grid=(B,),
        in_specs=[
            seq(D),                     # x
            full(D, 3 * D),             # merged wq|wk|wv
            full(1, 3 * D),             # merged biases
            full(D, D),                 # block-diagonal head mask
            full(D, H),                 # head indicator
            full(H, D),                 # head indicator^T
            full(D, D),                 # wo
            full(1, D),                 # bo
            full(1, D), full(1, D),     # ln1 gamma / beta
            full(D, F),                 # conv1 weight
            full(1, F),                 # conv1 bias
            full(F, D),                 # conv2 weight
            full(1, D),                 # conv2 bias
            full(1, D), full(1, D),     # ln2 gamma / beta
        ],
        out_specs=(seq(2 * D), seq(D)),
        compiler_params=_CP,
    )(x, wqkv, bqkv.reshape(1, 3 * D), mask, hind, hind_t,
      wo, bo.reshape(1, D), g1.reshape(1, D), b1.reshape(1, D),
      c1w, c1b.reshape(1, F), c2w, c2b.reshape(1, D),
      g2.reshape(1, D), b2.reshape(1, D))


def make_head_mask(D, H):
    idx = jnp.arange(D) // (D // H)
    return (idx[:, None] == idx[None, :]).astype(jnp.float32)


def make_head_indicator(D, H):
    idx = jnp.arange(D) // (D // H)
    return (idx[:, None] == jnp.arange(H)[None, :]).astype(jnp.float32)


# -------------------- 3) final encoder LayerNorm + output projection -------------------- #

def _final_ln_proj_kernel(x_ref, g_ref, b_ref, w_ref, pb_ref, o_ref):
    v = x_ref[...].astype(jnp.float32)
    xn = _layernorm(v, g_ref[...], b_ref[...])
    o_ref[...] = (jnp.dot(xn, w_ref[...], preferred_element_type=jnp.float32)
                  + pb_ref[...]).astype(o_ref.dtype)


def final_ln_proj(x, g, b, w, pb):
    """LayerNorm(x) @ w + pb with the output width padded to 128 lanes (dense stores)."""
    M, D = x.shape
    N = w.shape[1]
    Np = ((N + 127) // 128) * 128
    if Np != N:
        w = jnp.pad(w, ((0, 0), (0, Np - N)))
        pb = jnp.pad(pb, (0, Np - N))
    tm = _row_tile(M)
    out = pl.pallas_call(
        _final_ln_proj_kernel,
        out_shape=jax.ShapeDtypeStruct((M, Np), x.dtype),
        grid=(M // tm,),
        in_specs=[
            pl.BlockSpec((tm, D), lambda i: (i, 0)),
            pl.BlockSpec((1, D), lambda i: (0, 0)),
            pl.BlockSpec((1, D), lambda i: (0, 0)),
            pl.BlockSpec((D, Np), lambda i: (0, 0)),
            pl.BlockSpec((1, Np), lambda i: (0, 0)),
        ],
        out_specs=pl.BlockSpec((tm, Np), lambda i: (i, 0)),
        compiler_params=_CP,
    )(x, g.reshape(1, D), b.reshape(1, D), w, pb.reshape(1, Np))
    return out[:, :N]


# ------------------------------------ model glue ------------------------------------ #

def positional_embedding(L, D):
    position = jnp.arange(L, dtype=jnp.float32)[:, None]
    div_term = jnp.exp(jnp.arange(0, D, 2, dtype=jnp.float32)
                       * -(math.log(10000.0) / D))
    pe = jnp.zeros((L, D), jnp.float32)
    pe = pe.at[:, 0::2].set(jnp.sin(position * div_term))
    pe = pe.at[:, 1::2].set(jnp.cos(position * div_term))
    return pe


def init_params(key, enc_in, c_out, d_model, n_heads, d_ff, e_layers):
    def dense(k, shape, scale=0.05):
        return jax.random.normal(k, shape, jnp.float32) * scale

    keys = iter(jax.random.split(key, 4 + 8 * e_layers))
    params = {
        "n_heads": n_heads,
        # token embedding: Conv1d(enc_in, d_model, k=3, circular, bias=False)
        # flattened to (3*enc_in, d_model); rows [0:C]=tap(l-1), [C:2C]=tap(l), [2C:3C]=tap(l+1)
        "tok_w": dense(next(keys), (3 * enc_in, d_model)),
        "enc_ln_g": jnp.ones((d_model,), jnp.float32),
        "enc_ln_b": jnp.zeros((d_model,), jnp.float32),
        "proj_w": dense(next(keys), (d_model, c_out)),
        "proj_b": jnp.zeros((c_out,), jnp.float32),
        "layers": [],
    }
    for _ in range(e_layers):
        lp = {
            # wq | wk | wv pre-merged into one (D, 3D) weight -> single MXU weight push
            "wqkv": jnp.concatenate([dense(next(keys), (d_model, d_model)),
                                     dense(next(keys), (d_model, d_model)),
                                     dense(next(keys), (d_model, d_model))], axis=1),
            "bqkv": jnp.zeros((3 * d_model,), jnp.float32),
            "wo": dense(next(keys), (d_model, d_model)),
            "bo": jnp.zeros((d_model,), jnp.float32),
            "c1_w": dense(next(keys), (d_model, d_ff)),
            "c1_b": jnp.zeros((d_ff,), jnp.float32),
            "c2_w": dense(next(keys), (d_ff, d_model)),
            "c2_b": jnp.zeros((d_model,), jnp.float32),
            "ln1_g": jnp.ones((d_model,), jnp.float32),
            "ln1_b": jnp.zeros((d_model,), jnp.float32),
            "ln2_g": jnp.ones((d_model,), jnp.float32),
            "ln2_b": jnp.zeros((d_model,), jnp.float32),
        }
        params["layers"].append(lp)
    return params


def anomaly_transformer_forward(params, x):
    """x: (B, L, enc_in) -> (out (B, L, c_out), queries_list, keys_list)."""
    B, L, C = x.shape
    D = params["tok_w"].shape[1]
    H = params["n_heads"]
    E = D // H
    M = B * L

    # ---- DataEmbedding: circular conv (k=3) + sinusoidal PE ----
    # taps gathered in the wrapper (tiny (B, L, 3C) concat) so the kernel is a single
    # dense matmul — no (L, L) permutation matmuls, no per-step L x L operand DMAs.
    pe = positional_embedding(L, D)
    x_taps = jnp.concatenate(
        [jnp.roll(x, 1, axis=1), x, jnp.roll(x, -1, axis=1)], axis=-1)
    enc = data_embedding(x_taps, pe, params["tok_w"])          # (B, L, D)

    head_mask = make_head_mask(D, H)          # (D, D) block-diagonal
    head_ind = make_head_indicator(D, H)      # (D, H)
    head_ind_t = head_ind.T                   # (H, D)

    queries_list, keys_list = [], []
    for lp in params["layers"]:
        # ---- whole EncoderLayer fused in one pallas_call (grid over batch) ----
        qk, enc = encoder_layer(enc, lp["wqkv"], lp["bqkv"], head_mask,
                                head_ind, head_ind_t,
                                lp["wo"], lp["bo"], lp["ln1_g"], lp["ln1_b"],
                                lp["c1_w"], lp["c1_b"], lp["c2_w"], lp["c2_b"],
                                lp["ln2_g"], lp["ln2_b"])
        queries_list.append(qk[..., :D].reshape(B, L, H, E))
        keys_list.append(qk[..., D:].reshape(B, L, H, E))

    # ---- Encoder final LayerNorm + output projection, fused (lane-dense padded out) ----
    out = final_ln_proj(enc.reshape(M, D), params["enc_ln_g"], params["enc_ln_b"],
                        params["proj_w"], params["proj_b"]).reshape(B, L, -1)
    return out, queries_list, keys_list


if __name__ == "__main__":
    B, L = 2, 8                 # win_size = 8
    enc_in, c_out = 4, 4
    d_model, n_heads, e_layers, d_ff = 32, 4, 2, 32

    key = jax.random.PRNGKey(0)
    pkey, xkey = jax.random.split(key)
    params = init_params(pkey, enc_in, c_out, d_model, n_heads, d_ff, e_layers)
    x = jax.random.normal(xkey, (B, L, enc_in), jnp.float32)

    out, q_list, k_list = anomaly_transformer_forward(params, x)
    jax.block_until_ready(out)
    jax.block_until_ready(q_list)
    jax.block_until_ready(k_list)

    assert out.shape == (B, L, c_out)
    assert len(q_list) == e_layers and q_list[0].shape == (B, L, n_heads, d_model // n_heads)
    assert len(k_list) == e_layers and k_list[0].shape == (B, L, n_heads, d_model // n_heads)
    assert bool(jnp.all(jnp.isfinite(out)))
    print("KERNEL_OK")
</pallas_src>

<mosaic_0001>
module attributes {stable_mosaic.version = 11 : i64} {
  func.func @_embed_kernel(%arg0: i32, %arg1: memref<1x8x12xf32, #tpu.memory_space<vmem>>, %arg2: memref<12x32xf32, #tpu.memory_space<vmem>>, %arg3: memref<8x32xf32, #tpu.memory_space<vmem>>, %arg4: memref<1x8x32xf32, #tpu.memory_space<vmem>>) attributes {dimension_semantics = [#tpu.dimension_semantics<parallel>], iteration_bounds = array<i64: 2>, scalar_prefetch = 0 : i64, scratch_operands = 0 : i64, tpu.core_type = #tpu.core_type<tc>, window_params = [{transform_indices = @transform_0, window_bounds = array<i64: 1, 8, 12>}, {pipeline_mode = #tpu.pipeline_mode<synchronous>, transform_indices = @transform_1, window_bounds = array<i64: 12, 32>}, {pipeline_mode = #tpu.pipeline_mode<synchronous>, transform_indices = @transform_2, window_bounds = array<i64: 8, 32>}, {transform_indices = @transform_3, window_bounds = array<i64: 1, 8, 32>}]} {
    %c0 = arith.constant 0 : index
    %c0_0 = arith.constant 0 : index
    %c0_1 = arith.constant 0 : index
    %0 = vector.load %arg1[%c0, %c0_0, %c0_1] : memref<1x8x12xf32, #tpu.memory_space<vmem>>, vector<1x8x12xf32>
    %1 = vector.shape_cast %0 : vector<1x8x12xf32> to vector<8x12xf32>
    %c0_2 = arith.constant 0 : index
    %c0_3 = arith.constant 0 : index
    %2 = vector.load %arg2[%c0_2, %c0_3] : memref<12x32xf32, #tpu.memory_space<vmem>>, vector<12x32xf32>
    %cst = arith.constant dense<0.000000e+00> : vector<8x32xf32>
    %3 = tpu.matmul %1, %2, %cst {dimension_numbers = #tpu.dot_dimension_numbers<[1], [0], [0], [1], [0, 0, 1, 1], [], []>} : vector<8x12xf32>, vector<12x32xf32>, vector<8x32xf32> -> vector<8x32xf32>
    %c0_4 = arith.constant 0 : index
    %c0_5 = arith.constant 0 : index
    %4 = vector.load %arg3[%c0_4, %c0_5] : memref<8x32xf32, #tpu.memory_space<vmem>>, vector<8x32xf32>
    %5 = arith.addf %3, %4 : vector<8x32xf32>
    %c0_6 = arith.constant 0 : index
    %c0_7 = arith.constant 0 : index
    %c0_8 = arith.constant 0 : index
    %6 = vector.load %arg4[%c0_6, %c0_7, %c0_8] : memref<1x8x32xf32, #tpu.memory_space<vmem>>, vector<1x8x32xf32>
    %7 = vector.shape_cast %6 : vector<1x8x32xf32> to vector<8x32xf32>
    %8 = vector.shape_cast %5 : vector<8x32xf32> to vector<1x8x32xf32>
    tpu.vector_store %arg4[%c0_6, %c0_7, %c0_8], %8 {strides = array<i32>} : memref<1x8x32xf32, #tpu.memory_space<vmem>>, vector<1x8x32xf32>,
    return
  }
  func.func @transform_0(%arg0: i32) -> (i32, i32, i32) {
    %c0_i32 = arith.constant 0 : i32
    %c0_i32_0 = arith.constant 0 : i32
    %c0_i32_1 = arith.constant 0 : i32
    return %arg0, %c0_i32, %c0_i32_0 : i32, i32, i32
  }
  func.func @transform_1(%arg0: i32) -> (i32, i32) {
    %c0_i32 = arith.constant 0 : i32
    %c0_i32_0 = arith.constant 0 : i32
    %c0_i32_1 = arith.constant 0 : i32
    return %c0_i32, %c0_i32_0 : i32, i32
  }
  func.func @transform_2(%arg0: i32) -> (i32, i32) {
    %c0_i32 = arith.constant 0 : i32
    %c0_i32_0 = arith.constant 0 : i32
    %c0_i32_1 = arith.constant 0 : i32
    return %c0_i32, %c0_i32_0 : i32, i32
  }
  func.func @transform_3(%arg0: i32) -> (i32, i32, i32) {
    %c0_i32 = arith.constant 0 : i32
    %c0_i32_0 = arith.constant 0 : i32
    %c0_i32_1 = arith.constant 0 : i32
    return %arg0, %c0_i32, %c0_i32_0 : i32, i32, i32
  }
}

</mosaic_0001>

<bundles_post_ra>
// kernel: tpu_custom_call.1
= control target key start
LH: loop header
LB: loop body
LE: loop exit
PB: predicated region body
PF: predicated region fallthrough
CT: control target
= control target key end

     0   :  { %8 = vsyncpa [#allocation3], 0  ;;  %s922_s0 = inlined_call_operand.hbm [shape: f32[2,8,12], index: 0, kind: input, shape index: {}]   ;;  %s923_s1 = inlined_call_operand.hbm [shape: f32[12,32], index: 1, kind: input, shape index: {}]   ;;  %s924_s2 = inlined_call_operand.hbm [shape: f32[8,32], index: 2, kind: input, shape index: {}]   ;;  %s925_s3 = inlined_call_operand.hbm [shape: f32[2,8,32], index: 3, kind: output, shape index: {}]  }
   0x1   :  { %10 = vsyncpa [#allocation3 + $0x1], 0 }
   0x2   :  { %11 = vsyncpa [#allocation6], 0 }
   0x3   :  { %12 = vsyncpa [#allocation4], 0 }
   0x4   :  { %14 = vsyncpa [#allocation4 + $0x1], 0  ;;  %s693_s12 = smov 0   ;;  %s695_s13 = smov 0  }
   0x5   :  { %s697_s14 = smov 0   ;;  %s699_s15 = smov 0  }
   0x6 LB: > { %s714_s16 = sadd.s32 4294967295, %s661_s15   ;;  %s400_s17 = sadd.s32 4294967294, %s661_s15   ;;  %s661_s15 = sphi %s699_s15, %s945_s15   ;;  %s657_s14 = sphi %s697_s14, %s944_s14   ;;  %s653_s13 = sphi %s695_s13, %s943_s13   ;;  %s649_s12 = sphi %s693_s12, %s942_s12  }
   0x7   : > { %p40_p0 = scmp.ne.s32.totalorder %s653_s13, %s649_s12  ;;  %p926_p1 = scmp.eq.s32.totalorder %s714_s16, 0 }
   0x8   : > { %p112_p3 = scmp.eq.s32.totalorder %s400_s17, 1  ;;  %p401_p5 = scmp.ge.s32.totalorder %s661_s15, 1 }
   0x9   : > { %p723_p4 = por %p926_p1, %p40_p0  ;;  %p119_p7 = scmp.lt.s32.totalorder %s661_s15, 3 }
   0xa   : > { %p728_p6 = por %p112_p3, %p40_p0  ;;  %s663_s21 = smov [#allocation5]  }
   0xb   : > { %s929_s18 = scalar_select %p723_p4, 1, 0 }
   0xc   : > { %s930_s19 = scalar_select %p728_p6, 1, 0 }
   0xd   : > { %p733_p8 = pnand %p401_p5, %p119_p7  ;;  %s131_s22 = sshll.u32 %s663_s21, 4  ;;  %s737_s22 = int_to_ptr.vmem [resolvable:$true] %s131_s22 }
   0xe   : > { %s664_s24 = smov [#allocation7]   ;;  %s505_s28 = scalar_lea.hbm %s923_s1, 256 }
   0xf   : > { %p444_p9 = pneg %p733_p8  ;;  %s145_s25 = sshll.u32 %s664_s24, 4  ;;  %s748_s25 = int_to_ptr.vmem [resolvable:$true] %s145_s25 }
  0x10   : > { %p506_p12 = scmp.ne.s32.totalorder %s923_s1, %s505_s28  ;;  %p512_p5 = scmp.lt.u32.totalorder %s505_s28, %s923_s1 }
  0x11   : > { %p744_p11 = pnand %p444_p9, %p926_p1 }
  0x13   : > { %p507_p13 = pneg %p744_p11 }
  0x15   : > { %p508_p0 = pnand %p507_p13, %p506_p12 }
  0x17   : > { %p509_p3 = pneg %p508_p0 }
  0x19   : > { %p514_p7 = pnand %p512_p5, %p509_p3 }
  0x1b   : > { %517 = shalt.err (!%p514_p7)
}
  0x1c   : > { %s518_s6 = scalar_lea.vmem %s737_s22, 256  ;;  %p526_p2 = scmp.lt.s32.totalorder %s737_s22, %s737_s22 }
  0x1d   : > { %p519_p9 = scmp.ne.s32.totalorder %s737_s22, %s518_s6  ;;  %p527_p12 = scmp.lt.s32.totalorder %s518_s6, %s518_s6 }
  0x1f   : > { %p521_p10 = pnand %p519_p9, %p507_p13  ;;  %p528_p0 = por %p527_p12, %p526_p2 }
  0x21   : > { %p522_p1 = pneg %p521_p10 }
  0x23   : > { %p529_p6 = pnand %p528_p0, %p522_p1 }
  0x25   : > { %532 = shalt.err (!%p529_p6)
}
  0x26   : > { %s665_s7 = smov 128   ;;  %s666_s8 = smov 8  }
  0x27   : > { %447 = dma.hbm_to_vmem [thread:$0]  (!%p744_p11), %s923_s1, 256, %s737_s22, [#allocation6], %s665_s7, %s665_s7, %s666_s8  }
  0x28   : > { %s533_s21 = scalar_lea.hbm %s924_s2, 128 }
  0x29   : > { %p534_p2 = scmp.ne.s32.totalorder %s924_s2, %s533_s21  ;;  %p540_p10 = scmp.lt.u32.totalorder %s533_s21, %s924_s2 }
  0x2b   : > { %p536_p1 = pnand %p534_p2, %p507_p13 }
  0x2d   : > { %p537_p6 = pneg %p536_p1 }
  0x2f   : > { %p542_p3 = pnand %p540_p10, %p537_p6 }
  0x31   : > { %545 = shalt.err (!%p542_p3)
}
  0x32   : > { %s546_s22 = scalar_lea.vmem %s748_s25, 128  ;;  %p554_p12 = scmp.lt.s32.totalorder %s748_s25, %s748_s25 }
  0x33   : > { %p547_p5 = scmp.ne.s32.totalorder %s748_s25, %s546_s22  ;;  %p555_p0 = scmp.lt.s32.totalorder %s546_s22, %s546_s22 }
  0x35   : > { %p549_p7 = pnand %p547_p5, %p507_p13  ;;  %p556_p2 = por %p555_p0, %p554_p12 }
  0x37   : > { %p550_p9 = pneg %p549_p7 }
  0x39   : > { %p557_p1 = pnand %p556_p2, %p550_p9 }
  0x3b   : > { %560 = shalt.err (!%p557_p1)
}
  0x3c   : > { %450 = dma.hbm_to_vmem [thread:$0]  (!%p744_p11), %s924_s2, 128, %s748_s25, [#allocation6]  }
  0x3d   : > { %s803_s4 = sadd.s32 1, %s661_s15   ;;  %s27_s23 = sadd.s32 1, %s657_s14 }
  0x3e   : > { %s24_s5 = ssub.s32 %s661_s15, %s803_s4  ;;  %p34_p13 = scmp.ne.s32.totalorder %s657_s14, %s653_s13 }
  0x3f   : > { %p25_p6 = scmp.eq.s32.totalorder %s24_s5, 0  ;;  %p35_p10 = scmp.eq.s32.totalorder %s661_s15, 0 }
  0x40   : > { %p933_p3 = scmp.eq.s32.totalorder %s714_s16, 1  ;;  %p461_p7 = scmp.lt.s32.totalorder %s661_s15, 2 }
  0x41   : > { %s819_s7 = scalar_select %p25_p6, %s657_s14, %s27_s23  }
  0x42   : > { %p813_p5 = por %p933_p3, %p34_p13  ;;  %p36_p9 = por %p35_p10, %p34_p13 }
  0x43   : > { %s156_s8 = sand.u32 1, %s657_s14   ;;  %s406_s25 = sshll.u32 %s661_s15, 7 }
  0x44   : > { %s934_s6 = scalar_select %p813_p5, 1, 0 }
  0x45   : > { %s405_s9 = sshll.u32 %s156_s8, 3  ;;  %s826_s17 = scalar_lea.hbm %s922_s0, %s406_s25 }
  0x46   : > { %s160_s21 = scalar_lea.vmem [#allocation2], %s405_s9  ;;  %p830_p11 = pnand %p461_p7, %p36_p9 }
  0x47   : > { %s167_s24 = sshll.u32 %s160_s21, 4  ;;  %s157_s27 = scalar_lea.sflag [#allocation3], %s156_s8  ;;  %s828_s24 = int_to_ptr.vmem [resolvable:$true] %s167_s24 }
  0x48   : > { %s561_s28 = scalar_lea.hbm %s826_s17, 128  ;;  %p563_p0 = pneg %p830_p11 }
  0x49   : > { %p562_p12 = scmp.ne.s32.totalorder %s826_s17, %s561_s28  ;;  %s566_s30 = scalar_lea.hbm %s922_s0, 256 }
  0x4a   : > { %p567_p13 = scmp.lt.u32.totalorder %s826_s17, %s922_s0  ;;  %p568_p6 = scmp.lt.u32.totalorder %s566_s30, %s561_s28 }
  0x4b   : > { %p564_p2 = pnand %p563_p0, %p562_p12  ;;  %p570_p3 = scmp.lt.u32.totalorder %s561_s28, %s826_s17 }
  0x4c   : > { %p569_p10 = por %p568_p6, %p567_p13 }
  0x4d   : > { %p565_p1 = pneg %p564_p2 }
  0x4e   : > { %p571_p7 = por %p570_p3, %p569_p10 }
  0x50   : > { %p572_p9 = pnand %p571_p7, %p565_p1 }
  0x52   : > { %575 = shalt.err (!%p572_p9)
}
  0x53   : > { %s576_s8 = scalar_lea.vmem %s828_s24, 128  ;;  %s667_s9 = smov [#allocation2]  }
  0x54   : > { %p577_p12 = scmp.ne.s32.totalorder %s828_s24, %s576_s8  ;;  %s581_s25 = sshll.u32 %s667_s9, 4  ;;  %s582_s25 = int_to_ptr.vmem [resolvable:$false] %s581_s25 }
  0x55   : > { %s583_s10 = scalar_lea.vmem %s582_s25, 256  ;;  %p584_p4 = scmp.lt.s32.totalorder %s828_s24, %s582_s25 }
  0x56   : > { %p579_p2 = pnand %p577_p12, %p563_p0  ;;  %p585_p13 = scmp.lt.s32.totalorder %s583_s10, %s576_s8 }
  0x58   : > { %p580_p5 = pneg %p579_p2  ;;  %p586_p6 = por %p585_p13, %p584_p4 }
  0x5a   : > { %p587_p10 = pnand %p586_p6, %p580_p5 }
  0x5c   : > { %590 = shalt.err (!%p587_p10)
}
  0x5d   : > { %454 = dma.hbm_to_vmem [thread:$0]  (!%p830_p11), %s826_s17, 128, %s828_s24, %s157_s27  }
  0x5e   : > { %176 = sbr.rel (%p733_p8) target bundleno = 340 (0x154), region = 32  ;;  %s862_s11 = sand.u32 (!%p733_p8), 1, %s653_s13  }
  0x5f   : > { %s408_s21 = sshll.u32 (!%p733_p8), %s862_s11, 3  ;;  %s179_s28 = scalar_lea.sflag (!%p733_p8), [#allocation3], %s862_s11 }
  0x60   : > { %s182_s22 = scalar_lea.vmem (!%p733_p8), [#allocation2], %s408_s21  ;;  %p936_p4 = scmp.ne.s32.totalorder (!%p733_p8), %s929_s18, 0 }
  0x65   : > { %636 = dma.done.wait (%p936_p4), %s179_s28, 128  }
  0x66   : > { %638 = vsyncadd (%p936_p4), %s179_s28, 4294967168  ;;  %p937_p5 = scmp.eq.s32.totalorder %s714_s16, 0 }
  0x68   : > { %640 = dma.done.wait (%p937_p5), [#allocation6], 384   ;;  %p938_p11 = pmov %p937_p5 }
  0x69   : > { %v668_v0 = vmov 0.0|0.0   ;;  %vm669_vm0 = vmmov 0   ;;  %v670_v1 = vmov 0.0   ;;  %vm221_vm1 = vcmask 1043456   ;;  %v214_v2 = vld [vmem:[#allocation5] sm:$0xff]  ;;  %v213_v5 = vld [vmem:[%s182_s22] sm:$0xff] }
  0x6a   : > { %642 = vsyncadd (%p938_p11), [#allocation6], 4294966912  ;;  %428 = vmatprep.subr.bf16.mxu0 %v668_v0  ;;  %425 = vmatprep.mubr.msk.f32.mxu0 %vm669_vm0, %v670_v1  ;;  %v215_v3 = vld [vmem:[#allocation5 + $0x8] sm:$0xf]  ;;  %vm671_vm2 = vmmov 1   ;;  %vm217_vm4 = vcmask 97280  }
  0x6b   : > { %vm430_vm3 = vmpackc.low %vm221_vm1, %vm671_vm2  ;;  %v429_v4 = vpack.c.bf16 %v215_v3, %v214_v2  ;;  %v216_v6 = vld [vmem:[#allocation7] sm:$0xff]  ;;  %s415_s18 = sshll.u32 %s714_s16, 7  ;;  %s212_s20 = scalar_lea.vmem [#allocation8], %s408_s21  ;;  %vm295_vm5 = vcmask 261120  }
  0x6c   : > { %s311_s17 = sshll.u32 %s212_s20, 4  ;;  %s878_s27 = scalar_lea.hbm %s925_s3, %s415_s18  ;;  %s880_s17 = int_to_ptr.vmem [resolvable:$true] %s311_s17 }
  0x6d   : > { %431 = vmatpush3.bf16.msk.msra.mxu0 %vm430_vm3, %v429_v4  ;;  %s298_s29 = scalar_lea.sflag [#allocation4], %s862_s11  ;;  %s591_s30 = scalar_lea.vmem %s880_s17, 128 }
  0x6e   : > { %p592_p8 = scmp.ne.s32.totalorder %s880_s17, %s591_s30  ;;  %p939_p0 = scmp.ne.s32.totalorder %s934_s6, 0 }
  0x6f   : > { %s672_s16 = smov [#allocation8]  }
  0x70   : > { %426 = vmatmul.mubr.msk.f32.vlgmr.msra.gmra.mrb[0].mxu0 %vm217_vm4, %v213_v5  ;;  %p593_p1 = pnand %p592_p8, %p939_p0  ;;  %s595_s23 = sshll.u32 %s672_s16, 4  ;;  %s596_s23 = int_to_ptr.vmem [resolvable:$false] %s595_s23 }
  0x71   : > { %s597_s5 = scalar_lea.vmem %s596_s23, 256  ;;  %p598_p7 = scmp.lt.s32.totalorder %s880_s17, %s596_s23 }
  0x72   : > { %p594_p3 = pneg %p593_p1  ;;  %p599_p9 = scmp.lt.s32.totalorder %s597_s5, %s591_s30 }
  0x74   : > { %p600_p12 = por %p599_p9, %p598_p7 }
  0x76   : > { %p601_p2 = pnand %p600_p12, %p594_p3 }
 0x143   : > { %v291_v7 = vpop.f32.mrb[0].mxu0 }
 0x144   : > { %v292_v8 = vadd.f32 %v291_v7, %v216_v6  ;;  %v427_v9 = vpop.f32.mrb[1].mxu0 }
 0x146   : > { %296 = vst.msk [vmem:[%s212_s20] sm:$0xff] %vm295_vm5, %v292_v8 }
 0x147   : > { %604 = shalt.err (!%p601_p2)
}
 0x148   : > { %s605_s8 = scalar_lea.hbm %s878_s27, 128  ;;  %s609_s10 = scalar_lea.hbm %s925_s3, 256 }
 0x149   : > { %p606_p13 = scmp.ne.s32.totalorder %s878_s27, %s605_s8  ;;  %p610_p4 = scmp.lt.u32.totalorder %s878_s27, %s925_s3 }
 0x14a   : > { %p611_p5 = scmp.lt.u32.totalorder %s609_s10, %s605_s8  ;;  %p613_p8 = scmp.lt.u32.totalorder %s605_s8, %s878_s27 }
 0x14b   : > { %p607_p6 = pnand %p606_p13, %p939_p0 }
 0x14c   : > { %p612_p11 = por %p611_p5, %p610_p4 }
 0x14d   : > { %p608_p10 = pneg %p607_p6 }
 0x14e   : > { %p614_p1 = por %p613_p8, %p612_p11 }
 0x150   : > { %p615_p3 = pnand %p614_p1, %p608_p10 }
 0x152   : > { %618 = shalt.err (!%p615_p3)
}
 0x153   : > { %442 = dma.vmem_to_hbm [thread:$0]  (%p939_p0), %s880_s17, 128, %s878_s27, %s298_s29  }
 0x154 PF: > { %s323_s28 = sand.u32 1, %s649_s12   ;;  %p940_p7 = scmp.ne.s32.totalorder %s930_s19, 0 }
 0x155   : > { %p941_p9 = scmp.ge.s32.totalorder %s661_s15, 2  ;;  %s324_s22 = scalar_lea.sflag [#allocation4], %s323_s28 }
 0x157   : > { %p456_p12 = pnand %p941_p9, %p940_p7 }
 0x159   : > { %644 = dma.done.wait (!%p456_p12), %s324_s22, 128  }
 0x15a   : > { %646 = vsyncadd (!%p456_p12), %s324_s22, 4294967168  ;;  %p17_p2 = scmp.ge.s32.totalorder %s803_s4, 4   ;;  %s942_s12 = smov %s653_s13 }
 0x15b   : > { %s943_s13 = smov %s657_s14  ;;  %s944_s14 = smov %s819_s7 }
 0x15c   : > { %s945_s15 = smov %s803_s4  ;;  %19 = sbr.rel (!%p17_p2) target bundleno = 6 (0x6), region = 85 }
 0x163   :  { %329 = vsyncpa [#allocation3], 1 }
 0x164   :  { %331 = vsyncpa [#allocation3 + $0x1], 1 }
 0x165   :  { %332 = vsyncpa [#allocation6], 1 }
 0x166   :  { %333 = vsyncpa [#allocation4], 1 }
 0x167   :  { %335 = vsyncpa [#allocation4 + $0x1], 1 }

</bundles_post_ra>
